<compile_context>
chip_gen: v7x
topology: tpu7x:2x2x1
jax: 0.10.0
libtpu: 0.0.40
codegen_flags: <defaults>
</compile_context>

<pallas_src>
import jax
import jax.numpy as jnp
from jax import lax
from jax.experimental import pallas as pl
from jax.experimental.pallas import tpu as pltpu

LANES = 128
CHUNK_ROWS = 512   # rows per in-kernel accumulation chunk (bounds VMEM temporaries)


def _cdiv(a, b):
    return -(-a // b)


def _round_up(x, m):
    return ((x + m - 1) // m) * m


def _round_down(x, m):
    return (x // m) * m


def _tpu_config():
    """Per-generation tuning: (num_cores, per-input tile bytes, vmem_limit_bytes)."""
    kind = ""
    try:
        kind = jax.devices()[0].device_kind.lower()
    except Exception:
        pass
    if "v7" in kind or "7x" in kind:
        # 2 TensorCores/chip, 3.2 TB/s HBM: big tiles + both cores.
        return 2, 4 << 20, 32 << 20
    if "v6" in kind:
        # 1 TC/chip, ~1.4 TB/s HBM, 32 MiB scoped-VMEM default.
        return 1, 2 << 20, None
    # v5e & unknown/older: 1 TC/chip, 16 MiB scoped-VMEM default -> stay small.
    return 1, 1 << 20, None


def _make_kernel(tm, chunk, rows):
    n_chunks = tm // chunk

    def kernel(pred_ref, target_ref, sum_ref, cnt_ref, acc_sum, acc_cnt):
        i = pl.program_id(1)

        @pl.when(i == 0)
        def _():
            acc_sum[...] = jnp.zeros_like(acc_sum)
            acc_cnt[...] = jnp.zeros_like(acc_cnt)

        # Logical (un-clamped) block index: used for the validity mask so that
        # Pallas partial-block padding and duplicated (clamped) tail blocks
        # contribute exactly zero.
        blk = pl.program_id(0) * pl.num_programs(1) + i
        base_row = blk * tm

        @pl.loop(0, n_chunks)
        def _(k):
            off = pl.multiple_of(k * chunk, chunk)
            t = target_ref[pl.ds(off, chunk), :]
            p = pred_ref[pl.ds(off, chunk), :]
            row = base_row + off + lax.broadcasted_iota(jnp.int32, (chunk, LANES), 0)
            valid = (t > 0) & (row < rows)          # valid_mask = target > 0, in-bounds
            ad = jnp.abs(t - p).astype(jnp.float32)  # native-dtype sub/abs, f32 accumulate
            diff = jnp.where(valid, ad, jnp.float32(0))
            cnt = jnp.where(valid, jnp.float32(1), jnp.float32(0))
            # vreg-shaped accumulators: pure VPU adds per step.
            acc_sum[...] += diff.reshape(chunk // 8, 8, LANES).sum(axis=0)
            acc_cnt[...] += cnt.reshape(chunk // 8, 8, LANES).sum(axis=0)

        @pl.when(i == pl.num_programs(1) - 1)
        def _():
            # Single cross-lane/sublane reduce per core, once.
            sum_ref[...] = jnp.sum(acc_sum[...]).reshape(1, 1, 1)
            cnt_ref[...] = jnp.sum(acc_cnt[...]).reshape(1, 1, 1)

    return kernel


def masked_l1_loss(pred, target, weight=None):
    # `weight` is accepted but unused, matching the PyTorch forward.
    assert pred.ndim == target.ndim, "inconsistent dimensions"
    assert pred.shape == target.shape

    total = pred.size
    if total == 0:
        return jnp.float32(jnp.nan)   # torch mean of empty tensor -> nan

    p_flat = jnp.ravel(pred)   # free (contiguous reshape)
    t_flat = jnp.ravel(target)

    rem = total % LANES
    if rem:
        # TODO(synk): handle the <128-element tail without a full-array copy
        # (only hit when total % 128 != 0; zero-padded target => excluded by mask).
        pad = LANES - rem
        p_flat = jnp.pad(p_flat, (0, pad))
        t_flat = jnp.pad(t_flat, (0, pad))
    rows = p_flat.size // LANES

    p2 = p_flat.reshape(rows, LANES)   # free when no pad was needed
    t2 = t_flat.reshape(rows, LANES)
    if rows < 8:
        # tiny inputs only (< 1024 elements): pad up to one (8,128) tile
        p2 = jnp.pad(p2, ((0, 8 - rows), (0, 0)))
        t2 = jnp.pad(t2, ((0, 8 - rows), (0, 0)))
        rows = 8

    num_cores, tile_bytes, vmem_limit = _tpu_config()
    itemsize = max(jnp.dtype(pred.dtype).itemsize, jnp.dtype(target.dtype).itemsize)

    chunk = min(CHUNK_ROWS, _round_down(rows, 8))
    tm_cap = max(chunk, _round_down(tile_bytes // (LANES * itemsize), chunk))
    if _cdiv(rows, tm_cap) < num_cores:
        num_cores = 1                      # not enough blocks to feed 2 cores
    rows_per_core = _cdiv(rows, num_cores)
    tm = min(tm_cap, _round_up(rows_per_core, chunk), _round_down(rows, chunk))
    num_blocks = _cdiv(rows, tm)
    num_i = _cdiv(num_blocks, num_cores)

    def in_map(c, i):
        # Clamp so no block window starts past the array; duplicated tail blocks
        # are zeroed in-kernel via the logical row mask.
        return (jnp.minimum(c * num_i + i, num_blocks - 1), 0)

    kernel = _make_kernel(tm, chunk, rows)

    cp_kwargs = dict(dimension_semantics=("parallel", "arbitrary"))
    if vmem_limit is not None:
        cp_kwargs["vmem_limit_bytes"] = vmem_limit

    bytes_accessed = total * (jnp.dtype(pred.dtype).itemsize
                              + jnp.dtype(target.dtype).itemsize)

    sums, cnts = pl.pallas_call(
        kernel,
        out_shape=(
            jax.ShapeDtypeStruct((num_cores, 1, 1), jnp.float32),
            jax.ShapeDtypeStruct((num_cores, 1, 1), jnp.float32),
        ),
        grid_spec=pltpu.PrefetchScalarGridSpec(
            num_scalar_prefetch=0,
            grid=(num_cores, num_i),
            in_specs=[
                pl.BlockSpec((tm, LANES), in_map),
                pl.BlockSpec((tm, LANES), in_map),
            ],
            out_specs=(
                pl.BlockSpec((1, 1, 1), lambda c, i: (c, 0, 0)),
                pl.BlockSpec((1, 1, 1), lambda c, i: (c, 0, 0)),
            ),
            scratch_shapes=[
                pltpu.VMEM((8, LANES), jnp.float32),
                pltpu.VMEM((8, LANES), jnp.float32),
            ],
        ),
        compiler_params=pltpu.CompilerParams(**cp_kwargs),
        cost_estimate=pl.CostEstimate(
            flops=5 * total, transcendentals=0, bytes_accessed=bytes_accessed),
    )(p2, t2)

    # mean over valid entries (0/0 -> nan, matching torch mean of an empty tensor)
    return jnp.sum(sums) / jnp.sum(cnts)


if __name__ == "__main__":
    key = jax.random.PRNGKey(0)
    k1, k2 = jax.random.split(key)
    # NCHW: batch=2, channels=4, spatial=16
    pred = jax.random.normal(k1, (2, 4, 16, 16), dtype=jnp.float32)
    # target has a mix of positive (valid) and non-positive (invalid) entries
    target = jax.random.normal(k2, (2, 4, 16, 16), dtype=jnp.float32)

    loss = masked_l1_loss(pred, target)
    jax.block_until_ready(loss)

    # reference (plain JAX) check
    mask = target > 0
    ref = jnp.sum(jnp.abs(target - pred) * mask) / jnp.sum(mask)
    assert jnp.allclose(loss, ref, rtol=1e-5, atol=1e-6), (loss, ref)

    print("KERNEL_OK")
</pallas_src>

<mosaic_0001>
module attributes {stable_mosaic.version = 11 : i64} {
  func.func @kernel(%arg0: i32, %arg1: i32, %arg2: memref<16x128xf32, #tpu.memory_space<vmem>>, %arg3: memref<16x128xf32, #tpu.memory_space<vmem>>, %arg4: memref<1x1x1xf32, #tpu.memory_space<vmem>>, %arg5: memref<1x1x1xf32, #tpu.memory_space<vmem>>, %arg6: memref<8x128xf32, #tpu.memory_space<vmem>>, %arg7: memref<8x128xf32, #tpu.memory_space<vmem>>) attributes {dimension_semantics = [#tpu.dimension_semantics<parallel>, #tpu.dimension_semantics<arbitrary>], iteration_bounds = array<i64: 1, 1>, scalar_prefetch = 0 : i64, scratch_operands = 2 : i64, tpu.core_type = #tpu.core_type<tc>, window_params = [{transform_indices = @transform_0, window_bounds = array<i64: 16, 128>}, {transform_indices = @transform_1, window_bounds = array<i64: 16, 128>}, {transform_indices = @transform_2, window_bounds = array<i64: 1, 1, 1>}, {transform_indices = @transform_3, window_bounds = array<i64: 1, 1, 1>}]} {
    %c0_i32 = arith.constant 0 : i32
    %0 = arith.cmpi eq, %arg1, %c0_i32 : i32
    %1 = arith.extui %0 : i1 to i32
    %c0_i32_0 = arith.constant 0 : i32
    %2 = arith.cmpi ne, %1, %c0_i32_0 : i32
    scf.if %2 {
      %cst_23 = arith.constant 0.000000e+00 : f32
      %43 = vector.broadcast %cst_23 : f32 to vector<8x128xf32>
      %c0_24 = arith.constant 0 : index
      %c0_25 = arith.constant 0 : index
      %44 = vector.load %arg6[%c0_24, %c0_25] : memref<8x128xf32, #tpu.memory_space<vmem>>, vector<8x128xf32>
      tpu.vector_store %arg6[%c0_24, %c0_25], %43 {strides = array<i32>} : memref<8x128xf32, #tpu.memory_space<vmem>>, vector<8x128xf32>,
      %cst_26 = arith.constant 0.000000e+00 : f32
      %45 = vector.broadcast %cst_26 : f32 to vector<8x128xf32>
      %c0_27 = arith.constant 0 : index
      %c0_28 = arith.constant 0 : index
      %46 = vector.load %arg7[%c0_27, %c0_28] : memref<8x128xf32, #tpu.memory_space<vmem>>, vector<8x128xf32>
      tpu.vector_store %arg7[%c0_27, %c0_28], %45 {strides = array<i32>} : memref<8x128xf32, #tpu.memory_space<vmem>>, vector<8x128xf32>,
    } else {
    }
    %c1_i32 = arith.constant 1 : i32
    %3 = arith.muli %arg0, %c1_i32 : i32
    %4 = arith.addi %3, %arg1 : i32
    %c16_i32 = arith.constant 16 : i32
    %5 = arith.muli %4, %c16_i32 : i32
    %c0_i32_1 = arith.constant 0 : i32
    %c1_i32_2 = arith.constant 1 : i32
    %6 = arith.muli %c0_i32_1, %c1_i32_2 : i32
    %c0_i32_3 = arith.constant 0 : i32
    %7 = arith.addi %c0_i32_3, %6 : i32
    %c16_i32_4 = arith.constant 16 : i32
    %8 = arith.muli %7, %c16_i32_4 : i32
    %9 = tpu.assume_multiple %8, 16 : i32
    %10 = arith.index_cast %9 : i32 to index
    %c0 = arith.constant 0 : index
    %11 = vector.load %arg3[%10, %c0] : memref<16x128xf32, #tpu.memory_space<vmem>>, vector<16x128xf32>
    %12 = arith.index_cast %9 : i32 to index
    %c0_5 = arith.constant 0 : index
    %13 = vector.load %arg2[%12, %c0_5] : memref<16x128xf32, #tpu.memory_space<vmem>>, vector<16x128xf32>
    %14 = arith.addi %5, %9 : i32
    %15 = tpu.iota {dimensions = array<i32: 0>} : vector<16x128xi32>
    %16 = vector.broadcast %14 : i32 to vector<16x128xi32>
    %17 = arith.addi %16, %15 : vector<16x128xi32>
    %cst = arith.constant 0.000000e+00 : f32
    %18 = vector.broadcast %cst : f32 to vector<16x128xf32>
    %19 = arith.cmpf ogt, %11, %18 : vector<16x128xf32>
    %c16_i32_6 = arith.constant 16 : i32
    %20 = vector.broadcast %c16_i32_6 : i32 to vector<16x128xi32>
    %21 = arith.cmpi slt, %17, %20 : vector<16x128xi32>
    %22 = arith.andi %19, %21 : vector<16x128xi1>
    %23 = arith.subf %11, %13 : vector<16x128xf32>
    %24 = math.absf %23 : vector<16x128xf32>
    %cst_7 = arith.constant 0.000000e+00 : f32
    %25 = vector.broadcast %cst_7 : f32 to vector<16x128xf32>
    %26 = arith.select %22, %24, %25 : vector<16x128xi1>, vector<16x128xf32>
    %cst_8 = arith.constant 1.000000e+00 : f32
    %cst_9 = arith.constant 0.000000e+00 : f32
    %27 = vector.broadcast %cst_8 : f32 to vector<16x128xf32>
    %28 = vector.broadcast %cst_9 : f32 to vector<16x128xf32>
    %29 = arith.select %22, %27, %28 : vector<16x128xi1>, vector<16x128xf32>
    %c0_10 = arith.constant 0 : index
    %c0_11 = arith.constant 0 : index
    %30 = vector.load %arg6[%c0_10, %c0_11] : memref<8x128xf32, #tpu.memory_space<vmem>>, vector<8x128xf32>
    %31 = vector.shape_cast %26 : vector<16x128xf32> to vector<2x8x128xf32>
    %cst_12 = arith.constant dense<0.000000e+00> : vector<8x128xf32>
    %32 = vector.multi_reduction <add>, %31, %cst_12 [0] : vector<2x8x128xf32> to vector<8x128xf32>
    %33 = arith.addf %30, %32 : vector<8x128xf32>
    %c0_13 = arith.constant 0 : index
    %c0_14 = arith.constant 0 : index
    %34 = vector.load %arg6[%c0_13, %c0_14] : memref<8x128xf32, #tpu.memory_space<vmem>>, vector<8x128xf32>
    tpu.vector_store %arg6[%c0_13, %c0_14], %33 {strides = array<i32>} : memref<8x128xf32, #tpu.memory_space<vmem>>, vector<8x128xf32>,
    %c0_15 = arith.constant 0 : index
    %c0_16 = arith.constant 0 : index
    %35 = vector.load %arg7[%c0_15, %c0_16] : memref<8x128xf32, #tpu.memory_space<vmem>>, vector<8x128xf32>
    %36 = vector.shape_cast %29 : vector<16x128xf32> to vector<2x8x128xf32>
    %cst_17 = arith.constant dense<0.000000e+00> : vector<8x128xf32>
    %37 = vector.multi_reduction <add>, %36, %cst_17 [0] : vector<2x8x128xf32> to vector<8x128xf32>
    %38 = arith.addf %35, %37 : vector<8x128xf32>
    %c0_18 = arith.constant 0 : index
    %c0_19 = arith.constant 0 : index
    %39 = vector.load %arg7[%c0_18, %c0_19] : memref<8x128xf32, #tpu.memory_space<vmem>>, vector<8x128xf32>
    tpu.vector_store %arg7[%c0_18, %c0_19], %38 {strides = array<i32>} : memref<8x128xf32, #tpu.memory_space<vmem>>, vector<8x128xf32>,
    %c1_i32_20 = arith.constant 1 : i32
    %c0_i32_21 = arith.constant 0 : i32
    %40 = arith.cmpi eq, %arg1, %c0_i32_21 : i32
    %41 = arith.extui %40 : i1 to i32
    %c0_i32_22 = arith.constant 0 : i32
    %42 = arith.cmpi ne, %41, %c0_i32_22 : i32
    scf.if %42 {
      %c0_23 = arith.constant 0 : index
      %c0_24 = arith.constant 0 : index
      %43 = vector.load %arg6[%c0_23, %c0_24] : memref<8x128xf32, #tpu.memory_space<vmem>>, vector<8x128xf32>
      %44 = vector.shape_cast %43 : vector<8x128xf32> to vector<1x8x128xf32>
      %cst_25 = arith.constant dense<0.000000e+00> : vector<1xf32>
      %45 = vector.multi_reduction <add>, %44, %cst_25 [1, 2] : vector<1x8x128xf32> to vector<1xf32>
      %46 = vector.shape_cast %45 : vector<1xf32> to vector<1x1x1xf32>
      %47 = vector.extract %46[0, 0, 0] : f32 from vector<1x1x1xf32>
      %48 = vector.broadcast %47 : f32 to vector<1x1x1xf32>
      %c0_26 = arith.constant 0 : index
      %c0_27 = arith.constant 0 : index
      %c0_28 = arith.constant 0 : index
      %49 = vector.load %arg4[%c0_26, %c0_27, %c0_28] : memref<1x1x1xf32, #tpu.memory_space<vmem>>, vector<1x1x1xf32>
      tpu.vector_store %arg4[%c0_26, %c0_27, %c0_28], %48 {strides = array<i32>} : memref<1x1x1xf32, #tpu.memory_space<vmem>>, vector<1x1x1xf32>,
      %c0_29 = arith.constant 0 : index
      %c0_30 = arith.constant 0 : index
      %50 = vector.load %arg7[%c0_29, %c0_30] : memref<8x128xf32, #tpu.memory_space<vmem>>, vector<8x128xf32>
      %51 = vector.shape_cast %50 : vector<8x128xf32> to vector<1x8x128xf32>
      %cst_31 = arith.constant dense<0.000000e+00> : vector<1xf32>
      %52 = vector.multi_reduction <add>, %51, %cst_31 [1, 2] : vector<1x8x128xf32> to vector<1xf32>
      %53 = vector.shape_cast %52 : vector<1xf32> to vector<1x1x1xf32>
      %54 = vector.extract %53[0, 0, 0] : f32 from vector<1x1x1xf32>
      %55 = vector.broadcast %54 : f32 to vector<1x1x1xf32>
      %c0_32 = arith.constant 0 : index
      %c0_33 = arith.constant 0 : index
      %c0_34 = arith.constant 0 : index
      %56 = vector.load %arg5[%c0_32, %c0_33, %c0_34] : memref<1x1x1xf32, #tpu.memory_space<vmem>>, vector<1x1x1xf32>
      tpu.vector_store %arg5[%c0_32, %c0_33, %c0_34], %55 {strides = array<i32>} : memref<1x1x1xf32, #tpu.memory_space<vmem>>, vector<1x1x1xf32>,
    } else {
    }
    return
  }
  func.func @transform_0(%arg0: i32, %arg1: i32) -> (i32, i32) {
    %c1_i32 = arith.constant 1 : i32
    %0 = arith.muli %arg0, %c1_i32 : i32
    %1 = arith.addi %0, %arg1 : i32
    %c0_i32 = arith.constant 0 : i32
    %2 = arith.minsi %1, %c0_i32 : i32
    %c0_i32_0 = arith.constant 0 : i32
    %c0_i32_1 = arith.constant 0 : i32
    return %2, %c0_i32_0 : i32, i32
  }
  func.func @transform_1(%arg0: i32, %arg1: i32) -> (i32, i32) {
    %c1_i32 = arith.constant 1 : i32
    %0 = arith.muli %arg0, %c1_i32 : i32
    %1 = arith.addi %0, %arg1 : i32
    %c0_i32 = arith.constant 0 : i32
    %2 = arith.minsi %1, %c0_i32 : i32
    %c0_i32_0 = arith.constant 0 : i32
    %c0_i32_1 = arith.constant 0 : i32
    return %2, %c0_i32_0 : i32, i32
  }
  func.func @transform_2(%arg0: i32, %arg1: i32) -> (i32, i32, i32) {
    %c0_i32 = arith.constant 0 : i32
    %c0_i32_0 = arith.constant 0 : i32
    %c0_i32_1 = arith.constant 0 : i32
    return %arg0, %c0_i32, %c0_i32_0 : i32, i32, i32
  }
  func.func @transform_3(%arg0: i32, %arg1: i32) -> (i32, i32, i32) {
    %c0_i32 = arith.constant 0 : i32
    %c0_i32_0 = arith.constant 0 : i32
    %c0_i32_1 = arith.constant 0 : i32
    return %arg0, %c0_i32, %c0_i32_0 : i32, i32, i32
  }
}

</mosaic_0001>

<bundles_post_ra>
// kernel: tpu_custom_call.1
= control target key start
LH: loop header
LB: loop body
LE: loop exit
PB: predicated region body
PF: predicated region fallthrough
CT: control target
= control target key end

     0   :  { %9 = vsyncpa [#allocation5], 0  ;;  %s350_s0 = inlined_call_operand.hbm [shape: f32[16,128], index: 0, kind: input, shape index: {}]   ;;  %s351_s1 = inlined_call_operand.hbm [shape: f32[16,128], index: 1, kind: input, shape index: {}]   ;;  %s352_s2 = inlined_call_operand.hbm [shape: f32[1,1,1], index: 2, kind: output, shape index: {0}]   ;;  %s353_s3 = inlined_call_operand.hbm [shape: f32[1,1,1], index: 3, kind: output, shape index: {1}]  }
   0x1   :  { %10 = vsyncpa [#allocation8], 0 }
   0x2   :  { %11 = vsyncpa [#allocation6], 0 }
   0x3   :  { %12 = vsyncpa [#allocation11], 0  ;;  %s273_s12 = smov [#allocation4]   ;;  %s177_s16 = scalar_lea.hbm %s350_s0, 256 }
   0x4   :  { %s24_s13 = sshll.u32 %s273_s12, 4  ;;  %p178_p0 = scmp.ne.s32.totalorder %s350_s0, %s177_s16  ;;  %s25_s13 = int_to_ptr.vmem [resolvable:$true] %s24_s13 }
   0x5   :  { %p181_p1 = scmp.lt.u32.totalorder %s177_s16, %s350_s0 }
   0x7   :  { %p183_p2 = pnand %p181_p1, %p178_p0 }
   0x9   :  { %186 = shalt.err (!%p183_p2)
}
   0xa   :  { %s187_s21 = scalar_lea.vmem %s25_s13, 256  ;;  %p192_p4 = scmp.lt.s32.totalorder %s25_s13, %s25_s13 }
   0xb   :  { %p188_p3 = scmp.ne.s32.totalorder %s25_s13, %s187_s21  ;;  %p193_p5 = scmp.lt.s32.totalorder %s187_s21, %s187_s21 }
   0xd   :  { %p194_p6 = por %p193_p5, %p192_p4 }
   0xf   :  { %p195_p7 = pnand %p194_p6, %p188_p3 }
  0x11   :  { %198 = shalt.err (!%p195_p7)
}
  0x12   :  { %s274_s22 = smov 128   ;;  %s275_s23 = smov 8  }
  0x13   :  { %30 = dma.hbm_to_vmem [thread:$0]  %s350_s0, 256, %s25_s13, [#allocation5], %s274_s22, %s274_s22, %s275_s23  }
  0x14   :  { %s276_s26 = smov [#allocation7]   ;;  %s199_s30 = scalar_lea.hbm %s351_s1, 256 }
  0x15   :  { %s42_s27 = sshll.u32 %s276_s26, 4  ;;  %p200_p8 = scmp.ne.s32.totalorder %s351_s1, %s199_s30  ;;  %s43_s27 = int_to_ptr.vmem [resolvable:$true] %s42_s27 }
  0x16   :  { %p203_p9 = scmp.lt.u32.totalorder %s199_s30, %s351_s1 }
  0x18   :  { %p205_p10 = pnand %p203_p9, %p200_p8 }
  0x1a   :  { %208 = shalt.err (!%p205_p10)
}
  0x1b   :  { %s209_s8 = scalar_lea.vmem %s43_s27, 256  ;;  %p214_p12 = scmp.lt.s32.totalorder %s43_s27, %s43_s27 }
  0x1c   :  { %p210_p11 = scmp.ne.s32.totalorder %s43_s27, %s209_s8  ;;  %p215_p13 = scmp.lt.s32.totalorder %s209_s8, %s209_s8 }
  0x1e   :  { %p216_p0 = por %p215_p13, %p214_p12 }
  0x20   :  { %p217_p1 = pnand %p216_p0, %p210_p11 }
  0x22   :  { %220 = shalt.err (!%p217_p1)
}
  0x23   :  { %48 = dma.hbm_to_vmem [thread:$0]  %s351_s1, 256, %s43_s27, [#allocation8], %s274_s22, %s274_s22, %s275_s23  }
  0x24   :  { %265 = dma.done.wait [#allocation5], 256  }
  0x25   :  { %266 = vsyncadd [#allocation5], 4294967040 }
  0x26   :  { %267 = dma.done.wait [#allocation8], 256  }
  0x27   :  { %268 = vsyncadd [#allocation8], 4294967040  ;;  %v71_v0 = vld [vmem:[#allocation7] sm:$0xff]  ;;  %v72_v1 = vld [vmem:[#allocation7 + $0x8] sm:$0xff]  ;;  %v277_v10 = vmov 0.0   ;;  %s278_s1 = smov [#allocation9]  }
  0x28   :  { %v73_v2 = vld [vmem:[#allocation4] sm:$0xff]  ;;  %v74_v3 = vld [vmem:[#allocation4 + $0x8] sm:$0xff]  ;;  %vm82_vm0 = vcmp.gt.f32.partialorder %v71_v0, 0.0  ;;  %vm83_vm1 = vcmp.gt.f32.partialorder %v72_v1, 0.0  ;;  %s138_s10 = sshll.u32 %s278_s1, 4  ;;  %vm118_vm2 = vcmask 0   ;;  %s139_s10 = int_to_ptr.vmem [resolvable:$true] %s138_s10 }
  0x29   :  { %v88_v4 = vsub.f32 %v71_v0, %v73_v2  ;;  %v89_v5 = vsub.f32 %v72_v1, %v74_v3  ;;  %v94_v11 = vsel %vm82_vm0, 1.0, %v277_v10  ;;  %v95_v12 = vsel %vm83_vm1, 1.0, %v277_v10  ;;  %s279_s12 = smov [#allocation10]   ;;  %s221_s14 = scalar_lea.vmem %s139_s10, 16 }
  0x2a   :  { %v101_v14 = vadd.f32 %v95_v12, %v94_v11  ;;  %s148_s13 = sshll.u32 %s279_s12, 4  ;;  %p222_p2 = scmp.ne.s32.totalorder %s139_s10, %s221_s14  ;;  %s149_s13 = int_to_ptr.vmem [resolvable:$true] %s148_s13 }
  0x2b   :  { %v90_v6 = vand.u32 2147483647, %v88_v4  ;;  %v91_v7 = vand.u32 2147483647, %v89_v5  ;;  %s225_s15 = scalar_lea.vmem %s139_s10, 32  ;;  %p226_p3 = scmp.lt.s32.totalorder %s139_s10, %s139_s10 }
  0x2c   :  { %p227_p4 = scmp.lt.s32.totalorder %s225_s15, %s221_s14 }
  0x2d   :  { %v92_v8 = vsel %vm82_vm0, %v90_v6, 0.0  ;;  %v93_v9 = vsel %vm83_vm1, %v91_v7, 0.0 }
  0x2e   :  { %v97_v13 = vadd.f32 %v93_v9, %v92_v8  ;;  %p228_p5 = por %p227_p4, %p226_p3 }
  0x30   :  { %108 = vadd.xlane.f32.xlu0 %v97_v13  ;;  %p229_p6 = pnand %p228_p5, %p222_p2 }
  0x34   :  { %121 = vadd.xlane.f32.xlu0 %v101_v14 }
  0xbd   :  { %v109_v15 = vpop.xlane.xlu0 %108 }
  0xbe   :  { %v110_v16 = vrot.slane %v109_v15, 4 }
  0xc0   :  { %v111_v17 = vadd.f32 %v110_v16, %v109_v15 }
  0xc1   :  { %v122_v18 = vpop.xlane.xlu0 %121 }
  0xc2   :  { %v112_v19 = vrot.slane %v111_v17, 2  ;;  %v123_v20 = vrot.slane %v122_v18, 4 }
  0xc4   :  { %v124_v21 = vadd.f32 %v123_v20, %v122_v18  ;;  %v113_v22 = vadd.f32 %v112_v19, %v111_v17 }
  0xc6   :  { %v125_v23 = vrot.slane %v124_v21, 2  ;;  %v114_v24 = vrot.slane %v113_v22, 1 }
  0xc8   :  { %v126_v25 = vadd.f32 %v125_v23, %v124_v21  ;;  %v115_v26 = vadd.f32 %v114_v24, %v113_v22 }
  0xca   :  { %166 = vpush %v115_v26  ;;  %v127_v27 = vrot.slane %v126_v25, 1 }
  0xcc   :  { %v128_v28 = vadd.f32 %v127_v27, %v126_v25 }
  0xce   :  { %168 = vpush %v128_v28 }
  0xfb   :  { %s167_s11 = spop %166 }
  0xfc   :  { %v117_v29 = vstv %s167_s11 }
  0xfd   :  { %119 = vst.msk [vmem:[#allocation9] sm:$0x1] %vm118_vm2, %v117_v29 }
  0xfe   :  { %232 = shalt.err (!%p229_p6)
}
  0xff   :  { %s233_s18 = scalar_lea.hbm %s352_s2, 16 }
 0x100   :  { %p234_p7 = scmp.ne.s32.totalorder %s352_s2, %s233_s18  ;;  %p237_p8 = scmp.lt.u32.totalorder %s233_s18, %s352_s2 }
 0x102   :  { %p239_p9 = pnand %p237_p8, %p234_p7 }
 0x104   :  { %242 = shalt.err (!%p239_p9)
}
 0x105   :  { %141 = dma.vmem_to_hbm [thread:$0]  %s139_s10, 16, %s352_s2, [#allocation6]  }
 0x106   :  { %s169_s25 = spop %168  ;;  %s243_s26 = scalar_lea.vmem %s149_s13, 16 }
 0x107   :  { %v130_v30 = vstv %s169_s25  ;;  %p244_p10 = scmp.ne.s32.totalorder %s149_s13, %s243_s26  ;;  %s247_s27 = scalar_lea.vmem %s149_s13, 32 }
 0x108   :  { %131 = vst.msk [vmem:[#allocation10] sm:$0x1] %vm118_vm2, %v130_v30  ;;  %p248_p11 = scmp.lt.s32.totalorder %s149_s13, %s149_s13  ;;  %p249_p12 = scmp.lt.s32.totalorder %s247_s27, %s243_s26 }
 0x10a   :  { %p250_p13 = por %p249_p12, %p248_p11 }
 0x10c   :  { %p251_p0 = pnand %p250_p13, %p244_p10 }
 0x10e   :  { %254 = shalt.err (!%p251_p0)
}
 0x10f   :  { %s255_s30 = scalar_lea.hbm %s353_s3, 16 }
 0x110   :  { %p256_p1 = scmp.ne.s32.totalorder %s353_s3, %s255_s30  ;;  %p259_p2 = scmp.lt.u32.totalorder %s255_s30, %s353_s3 }
 0x112   :  { %p261_p3 = pnand %p259_p2, %p256_p1 }
 0x114   :  { %264 = shalt.err (!%p261_p3)
}
 0x115   :  { %151 = dma.vmem_to_hbm [thread:$0]  %s149_s13, 16, %s353_s3, [#allocation11]  }
 0x116   :  { %269 = dma.done.wait [#allocation6], 16  }
 0x117   :  { %270 = vsyncadd [#allocation6], 4294967280 }
 0x118   :  { %271 = dma.done.wait [#allocation11], 16  }
 0x119   :  { %272 = vsyncadd [#allocation11], 4294967280 }
 0x11a   :  { %158 = vsyncpa [#allocation5], 1 }
 0x11b   :  { %159 = vsyncpa [#allocation8], 1 }
 0x11c   :  { %160 = vsyncpa [#allocation6], 1 }
 0x11d   :  { %161 = vsyncpa [#allocation11], 1 }

</bundles_post_ra>
